<compile_context>
chip_gen: v7x
topology: tpu7x:2x2x1
jax: 0.10.0
libtpu: 0.0.40
codegen_flags: <defaults>
</compile_context>

<pallas_src>
import functools

import jax
import jax.numpy as jnp
from jax.experimental import pallas as pl
from jax.experimental.pallas import tpu as pltpu

EPS = 1e-6  # Annotated-Transformer-style LayerNorm: unbiased std, eps added to std.


def _round_up(x: int, m: int) -> int:
    return (x + m - 1) // m * m


def _pick_tile_r(rows: int, h_in: int, h_out: int, max_tile: int = 1024) -> int:
    """Row tile so double-buffered x/out tiles stay well under scoped VMEM on all gens."""
    budget = 24 << 20                              # ~24 MiB for pipelined row tiles
    bytes_per_row = 4 * (h_in + h_out) * 2         # f32, double-buffered in + out
    tr = max(8, min(max_tile, budget // max(bytes_per_row, 1)))
    tr = (tr // 8) * 8                             # keep sublane-aligned
    tr = min(tr, _round_up(rows, 8))               # don't exceed (padded) problem size
    return max(tr, 8)


def _sublayer_connection_kernel(x_ref, gamma_ref, beta_ref, w_ref, b_ref, o_ref,
                                *, add_residual: bool, mxu_dtype):
    """Fused: y = dropout(Linear(LayerNorm(x))) [+ x if size_in == size_out]."""
    x = x_ref[...].astype(jnp.float32)                       # (TILE_R, H_in)
    h_in = x.shape[-1]

    gamma = gamma_ref[...].astype(jnp.float32)               # (1, H_in)
    beta = beta_ref[...].astype(jnp.float32)                 # (1, H_in)
    bias = b_ref[...].astype(jnp.float32)                    # (1, H_out)

    # --- LayerNorm (unbiased variance, eps added to std) — stats kept in f32 ---
    mean = jnp.mean(x, axis=-1, keepdims=True)               # (TILE_R, 1)
    diff = x - mean
    var = jnp.sum(diff * diff, axis=-1, keepdims=True) * (1.0 / (h_in - 1))
    std = jnp.sqrt(var)
    inv_std = pl.reciprocal(std + EPS, approx=True)          # EUP slot, not VPU divide
    normed = gamma * (diff * inv_std) + beta                 # (TILE_R, H_in)

    # --- sublayer: Linear(size_in -> size_out) on the MXU (bf16 in, f32 acc) ---
    lhs = normed.astype(mxu_dtype) if mxu_dtype is not None else normed
    y = jnp.dot(lhs, w_ref[...], preferred_element_type=jnp.float32)
    y = y + bias                                             # (TILE_R, H_out), f32

    # --- dropout: identity (eval mode) ---

    # --- residual connection (only when last dims match), done in f32 ---
    if add_residual:
        y = y + x

    o_ref[...] = y.astype(o_ref.dtype)


def sublayer_connection(x, gamma, beta, w, b, *, mxu_dtype=jnp.bfloat16):
    """x: (B, S, H_in); gamma/beta: (H_in,); w: (H_in, H_out); b: (H_out,)."""
    B, S, H_in = x.shape
    H_out = w.shape[1]
    add_residual = (H_in == H_out)

    rows = B * S
    x2d = x.reshape(rows, H_in)

    tile_r = _pick_tile_r(rows, H_in, H_out)
    rows_padded = _round_up(rows, tile_r)
    if rows_padded != rows:
        # Zero rows are harmless: diff==0 => normed==beta, output rows are sliced off.
        x2d = jnp.pad(x2d, ((0, rows_padded - rows), (0, 0)))

    gamma2d = gamma.reshape(1, H_in)
    beta2d = beta.reshape(1, H_in)
    b2d = b.reshape(1, H_out)
    w_mxu = w.astype(mxu_dtype) if mxu_dtype is not None else w

    kernel = functools.partial(_sublayer_connection_kernel,
                               add_residual=add_residual,
                               mxu_dtype=mxu_dtype)

    itemsize = jnp.dtype(x.dtype).itemsize
    cost = pl.CostEstimate(
        flops=2 * rows * H_in * H_out + 8 * rows * H_in,
        transcendentals=2 * rows,  # sqrt + reciprocal per row
        bytes_accessed=rows * (H_in + H_out) * itemsize
        + H_in * H_out * jnp.dtype(w_mxu.dtype).itemsize,
    )

    out2d = pl.pallas_call(
        kernel,
        out_shape=jax.ShapeDtypeStruct((rows_padded, H_out), x.dtype),
        grid_spec=pltpu.PrefetchScalarGridSpec(
            num_scalar_prefetch=0,
            grid=(rows_padded // tile_r,),
            in_specs=[
                pl.BlockSpec((tile_r, H_in), lambda i: (i, 0)),   # x: row-tiled
                pl.BlockSpec((1, H_in), lambda i: (0, 0)),        # gamma: resident
                pl.BlockSpec((1, H_in), lambda i: (0, 0)),        # beta:  resident
                pl.BlockSpec((H_in, H_out), lambda i: (0, 0)),    # w:     resident
                pl.BlockSpec((1, H_out), lambda i: (0, 0)),       # bias:  resident
            ],
            out_specs=pl.BlockSpec((tile_r, H_out), lambda i: (i, 0)),
        ),
        compiler_params=pltpu.CompilerParams(
            dimension_semantics=("parallel",),      # independent row tiles (v7x 2 TCs)
            vmem_limit_bytes=48 * 1024 * 1024,      # > v5e's 16 MiB scoped default
        ),
        cost_estimate=cost,
    )(x2d, gamma2d, beta2d, w_mxu, b2d)

    if rows_padded != rows:
        out2d = out2d[:rows]
    return out2d.reshape(B, S, H_out)


def _reference(x, gamma, beta, w, b, mxu_dtype=None):
    """Pure-JAX reference matching the PyTorch forward (eval mode)."""
    h_in = x.shape[-1]
    xf = x.astype(jnp.float32)
    mean = jnp.mean(xf, axis=-1, keepdims=True)
    diff = xf - mean
    var = jnp.sum(diff * diff, axis=-1, keepdims=True) / (h_in - 1)
    std = jnp.sqrt(var)
    normed = gamma * diff / (std + EPS) + beta
    lhs = normed.astype(mxu_dtype) if mxu_dtype is not None else normed
    rhs = w.astype(mxu_dtype) if mxu_dtype is not None else w
    y = jnp.dot(lhs, rhs, preferred_element_type=jnp.float32) + b
    if x.shape[-1] == y.shape[-1]:
        y = y + xf
    return y.astype(x.dtype)


if __name__ == "__main__":
    key = jax.random.PRNGKey(0)
    B, S, H_in, H_out = 2, 8, 32, 32   # size_in == size_out -> residual is applied

    kx, kg, kb, kw, kbias = jax.random.split(key, 5)
    x = jax.random.normal(kx, (B, S, H_in), dtype=jnp.float32)
    # LayerNorm params: a_2 (ones-ish) and b_2 (zeros-ish) perturbed deterministically
    gamma = jnp.ones((H_in,), jnp.float32) + 0.01 * jax.random.normal(kg, (H_in,))
    beta = 0.01 * jax.random.normal(kb, (H_in,))
    # Sublayer = Linear(size_in, size_out)
    w = jax.random.normal(kw, (H_in, H_out), dtype=jnp.float32) / jnp.sqrt(H_in)
    b = 0.01 * jax.random.normal(kbias, (H_out,))

    out = sublayer_connection(x, gamma, beta, w, b)
    jax.block_until_ready(out)
    assert out.shape == (B, S, H_out)

    # bf16-matched reference (same MXU precision) -> tight-ish tolerance
    ref_bf16 = _reference(x, gamma, beta, w, b, mxu_dtype=jnp.bfloat16)
    assert jnp.allclose(out, ref_bf16, atol=1e-2, rtol=1e-2), "mismatch vs bf16 reference"

    # full-f32 reference (PyTorch eval forward) -> bf16-MXU-level tolerance
    ref_f32 = _reference(x, gamma, beta, w, b, mxu_dtype=None)
    assert jnp.allclose(out, ref_f32, atol=5e-2, rtol=5e-2), "mismatch vs f32 reference"

    print("KERNEL_OK")
</pallas_src>

<mosaic_0001>
module attributes {stable_mosaic.version = 11 : i64} {
  func.func @_sublayer_connection_kernel(%arg0: i32, %arg1: memref<16x32xf32, #tpu.memory_space<vmem>>, %arg2: memref<1x32xf32, #tpu.memory_space<vmem>>, %arg3: memref<1x32xf32, #tpu.memory_space<vmem>>, %arg4: memref<32x32xbf16, #tpu.memory_space<vmem>>, %arg5: memref<1x32xf32, #tpu.memory_space<vmem>>, %arg6: memref<16x32xf32, #tpu.memory_space<vmem>>) attributes {dimension_semantics = [#tpu.dimension_semantics<parallel>], iteration_bounds = array<i64: 1>, scalar_prefetch = 0 : i64, scratch_operands = 0 : i64, tpu.core_type = #tpu.core_type<tc>, window_params = [{transform_indices = @transform_0, window_bounds = array<i64: 16, 32>}, {pipeline_mode = #tpu.pipeline_mode<synchronous>, transform_indices = @transform_1, window_bounds = array<i64: 1, 32>}, {pipeline_mode = #tpu.pipeline_mode<synchronous>, transform_indices = @transform_2, window_bounds = array<i64: 1, 32>}, {pipeline_mode = #tpu.pipeline_mode<synchronous>, transform_indices = @transform_3, window_bounds = array<i64: 32, 32>}, {pipeline_mode = #tpu.pipeline_mode<synchronous>, transform_indices = @transform_4, window_bounds = array<i64: 1, 32>}, {transform_indices = @transform_5, window_bounds = array<i64: 16, 32>}]} {
    %c0 = arith.constant 0 : index
    %c0_0 = arith.constant 0 : index
    %0 = vector.load %arg1[%c0, %c0_0] : memref<16x32xf32, #tpu.memory_space<vmem>>, vector<16x32xf32>
    %c0_1 = arith.constant 0 : index
    %c0_2 = arith.constant 0 : index
    %1 = vector.load %arg2[%c0_1, %c0_2] : memref<1x32xf32, #tpu.memory_space<vmem>>, vector<1x32xf32>
    %c0_3 = arith.constant 0 : index
    %c0_4 = arith.constant 0 : index
    %2 = vector.load %arg3[%c0_3, %c0_4] : memref<1x32xf32, #tpu.memory_space<vmem>>, vector<1x32xf32>
    %c0_5 = arith.constant 0 : index
    %c0_6 = arith.constant 0 : index
    %3 = vector.load %arg5[%c0_5, %c0_6] : memref<1x32xf32, #tpu.memory_space<vmem>>, vector<1x32xf32>
    %cst = arith.constant dense<0.000000e+00> : vector<16xf32>
    %4 = vector.multi_reduction <add>, %0, %cst [1] : vector<16x32xf32> to vector<16xf32>
    %5 = vector.shape_cast %4 : vector<16xf32> to vector<16x1xf32>
    %cst_7 = arith.constant 3.200000e+01 : f32
    %6 = vector.broadcast %cst_7 : f32 to vector<16x1xf32>
    %7 = arith.divf %5, %6 : vector<16x1xf32>
    %8 = vector.broadcast %7 : vector<16x1xf32> to vector<16x32xf32>
    %9 = arith.subf %0, %8 : vector<16x32xf32>
    %10 = arith.mulf %9, %9 : vector<16x32xf32>
    %cst_8 = arith.constant dense<0.000000e+00> : vector<16xf32>
    %11 = vector.multi_reduction <add>, %10, %cst_8 [1] : vector<16x32xf32> to vector<16xf32>
    %12 = vector.shape_cast %11 : vector<16xf32> to vector<16x1xf32>
    %cst_9 = arith.constant 0.0322580636 : f32
    %13 = vector.broadcast %cst_9 : f32 to vector<16x1xf32>
    %14 = arith.mulf %12, %13 : vector<16x1xf32>
    %15 = math.sqrt %14 : vector<16x1xf32>
    %cst_10 = arith.constant 9.99999997E-7 : f32
    %16 = vector.broadcast %cst_10 : f32 to vector<16x1xf32>
    %17 = arith.addf %15, %16 : vector<16x1xf32>
    %18 = tpu.reciprocal %17 {approx = true} : vector<16x1xf32> -> vector<16x1xf32>
    %19 = vector.broadcast %18 : vector<16x1xf32> to vector<16x32xf32>
    %20 = arith.mulf %9, %19 : vector<16x32xf32>
    %21 = vector.broadcast %1 : vector<1x32xf32> to vector<16x32xf32>
    %22 = arith.mulf %21, %20 : vector<16x32xf32>
    %23 = vector.broadcast %2 : vector<1x32xf32> to vector<16x32xf32>
    %24 = arith.addf %22, %23 : vector<16x32xf32>
    %25 = arith.truncf %24 : vector<16x32xf32> to vector<16x32xbf16>
    %c0_11 = arith.constant 0 : index
    %c0_12 = arith.constant 0 : index
    %26 = vector.load %arg4[%c0_11, %c0_12] : memref<32x32xbf16, #tpu.memory_space<vmem>>, vector<32x32xbf16>
    %cst_13 = arith.constant dense<0.000000e+00> : vector<16x32xf32>
    %27 = tpu.matmul %25, %26, %cst_13 {dimension_numbers = #tpu.dot_dimension_numbers<[1], [0], [0], [1], [0, 0, 1, 1], [], []>} : vector<16x32xbf16>, vector<32x32xbf16>, vector<16x32xf32> -> vector<16x32xf32>
    %28 = vector.broadcast %3 : vector<1x32xf32> to vector<16x32xf32>
    %29 = arith.addf %27, %28 : vector<16x32xf32>
    %30 = arith.addf %29, %0 : vector<16x32xf32>
    %c0_14 = arith.constant 0 : index
    %c0_15 = arith.constant 0 : index
    %31 = vector.load %arg6[%c0_14, %c0_15] : memref<16x32xf32, #tpu.memory_space<vmem>>, vector<16x32xf32>
    tpu.vector_store %arg6[%c0_14, %c0_15], %30 {strides = array<i32>} : memref<16x32xf32, #tpu.memory_space<vmem>>, vector<16x32xf32>,
    return
  }
  func.func @transform_0(%arg0: i32) -> (i32, i32) {
    %c0_i32 = arith.constant 0 : i32
    %c0_i32_0 = arith.constant 0 : i32
    return %arg0, %c0_i32 : i32, i32
  }
  func.func @transform_1(%arg0: i32) -> (i32, i32) {
    %c0_i32 = arith.constant 0 : i32
    %c0_i32_0 = arith.constant 0 : i32
    %c0_i32_1 = arith.constant 0 : i32
    return %c0_i32, %c0_i32_0 : i32, i32
  }
  func.func @transform_2(%arg0: i32) -> (i32, i32) {
    %c0_i32 = arith.constant 0 : i32
    %c0_i32_0 = arith.constant 0 : i32
    %c0_i32_1 = arith.constant 0 : i32
    return %c0_i32, %c0_i32_0 : i32, i32
  }
  func.func @transform_3(%arg0: i32) -> (i32, i32) {
    %c0_i32 = arith.constant 0 : i32
    %c0_i32_0 = arith.constant 0 : i32
    %c0_i32_1 = arith.constant 0 : i32
    return %c0_i32, %c0_i32_0 : i32, i32
  }
  func.func @transform_4(%arg0: i32) -> (i32, i32) {
    %c0_i32 = arith.constant 0 : i32
    %c0_i32_0 = arith.constant 0 : i32
    %c0_i32_1 = arith.constant 0 : i32
    return %c0_i32, %c0_i32_0 : i32, i32
  }
  func.func @transform_5(%arg0: i32) -> (i32, i32) {
    %c0_i32 = arith.constant 0 : i32
    %c0_i32_0 = arith.constant 0 : i32
    return %arg0, %c0_i32 : i32, i32
  }
}

</mosaic_0001>

<bundles_post_ra>
// kernel: tpu_custom_call.1
= control target key start
LH: loop header
LB: loop body
LE: loop exit
PB: predicated region body
PF: predicated region fallthrough
CT: control target
= control target key end

     0   :  { %10 = vsyncpa [#allocation3], 0  ;;  %s417_s0 = inlined_call_operand.hbm [shape: f32[16,32], index: 0, kind: input, shape index: {}]   ;;  %s418_s1 = inlined_call_operand.vmem [shape: f32[1,32], index: 1, kind: input, shape index: {}]   ;;  %s419_s2 = inlined_call_operand.vmem [shape: f32[1,32], index: 2, kind: input, shape index: {}]   ;;  %s420_s3 = inlined_call_operand.hbm [shape: bf16[32,32], index: 3, kind: input, shape index: {}]   ;;  %s421_s4 = inlined_call_operand.vmem [shape: f32[1,32], index: 4, kind: input, shape index: {}]   ;;  %s422_s5 = inlined_call_operand.hbm [shape: f32[16,32], index: 5, kind: output, shape index: {}]  }
   0x1   :  { %11 = vsyncpa [#allocation6], 0 }
   0x2   :  { %12 = vsyncpa [#allocation4], 0  ;;  %s310_s18 = smov [#allocation2]   ;;  %s238_s22 = scalar_lea.hbm %s417_s0, 256 }
   0x3   :  { %s18_s19 = sshll.u32 %s310_s18, 4  ;;  %p239_p0 = scmp.ne.s32.totalorder %s417_s0, %s238_s22  ;;  %s19_s19 = int_to_ptr.vmem [resolvable:$true] %s18_s19 }
   0x4   :  { %p242_p1 = scmp.lt.u32.totalorder %s238_s22, %s417_s0 }
   0x6   :  { %p244_p2 = pnand %p242_p1, %p239_p0 }
   0x8   :  { %247 = shalt.err (!%p244_p2)
}
   0x9   :  { %s248_s27 = scalar_lea.vmem %s19_s19, 256  ;;  %p253_p4 = scmp.lt.s32.totalorder %s19_s19, %s19_s19 }
   0xa   :  { %p249_p3 = scmp.ne.s32.totalorder %s19_s19, %s248_s27  ;;  %p254_p5 = scmp.lt.s32.totalorder %s248_s27, %s248_s27 }
   0xc   :  { %p255_p6 = por %p254_p5, %p253_p4 }
   0xe   :  { %p256_p7 = pnand %p255_p6, %p249_p3 }
  0x10   :  { %259 = shalt.err (!%p256_p7)
}
  0x11   :  { %s311_s28 = smov 128   ;;  %s312_s29 = smov 8  }
  0x12   :  { %24 = dma.hbm_to_vmem [thread:$0]  %s417_s0, 256, %s19_s19, [#allocation3], %s311_s28, %s311_s28, %s312_s29  }
  0x13   :  { %s313_s7 = smov [#allocation5]   ;;  %s260_s11 = scalar_lea.hbm %s420_s3, 256 }
  0x14   :  { %s34_s8 = sshll.u32 %s313_s7, 4  ;;  %p261_p8 = scmp.ne.s32.totalorder %s420_s3, %s260_s11  ;;  %s35_s8 = int_to_ptr.vmem [resolvable:$true] %s34_s8 }
  0x15   :  { %p264_p9 = scmp.lt.u32.totalorder %s260_s11, %s420_s3 }
  0x17   :  { %p266_p10 = pnand %p264_p9, %p261_p8 }
  0x19   :  { %269 = shalt.err (!%p266_p10)
}
  0x1a   :  { %s270_s16 = scalar_lea.vmem %s35_s8, 256  ;;  %p275_p12 = scmp.lt.s32.totalorder %s35_s8, %s35_s8 }
  0x1b   :  { %p271_p11 = scmp.ne.s32.totalorder %s35_s8, %s270_s16  ;;  %p276_p13 = scmp.lt.s32.totalorder %s270_s16, %s270_s16 }
  0x1d   :  { %p277_p0 = por %p276_p13, %p275_p12 }
  0x1f   :  { %p278_p1 = pnand %p277_p0, %p271_p11 }
  0x21   :  { %281 = shalt.err (!%p278_p1)
}
  0x22   :  { %s314_s0 = smov 64   ;;  %s315_s17 = smov 4  }
  0x23   :  { %40 = dma.hbm_to_vmem [thread:$0]  %s420_s3, 256, %s35_s8, [#allocation6], %s314_s0, %s314_s0, %s315_s17  }
  0x24   :  { %304 = dma.done.wait [#allocation3], 256  }
  0x25   :  { %305 = vsyncadd [#allocation3], 4294967040 }
  0x26   :  { %306 = dma.done.wait [#allocation6], 256  }
  0x27   :  { %307 = vsyncadd [#allocation6], 4294967040  ;;  %vm55_vm0 = vcmask 261120   ;;  %v376_v0 = vld [vmem:[#allocation2] sm:$0xff]  ;;  %v378_v1 = vld [vmem:[#allocation2 + $0x8] sm:$0xff]  ;;  %v316_v15 = vmov 0.0  }
  0x28   :  { %v56_v2 = vsel %vm55_vm0, %v376_v0, 0.0  ;;  %v59_v3 = vsel %vm55_vm0, %v378_v1, 0.0  ;;  %v228_v14 = vld [vmem:[#allocation5] sm:$0xff]   ;;  %211 = vmatprep.subr.bf16.mxu0 %v316_v15  ;;  %vm317_vm1 = vmmov 0   ;;  %v229_v16 = vld [vmem:[#allocation5 + $0x8] sm:$0xff]  }
  0x29   :  { %57 = vadd.xlane.f32.xlu0 %v56_v2  ;;  %215 = vmatprep.mubr.msk.bf16.mxu0 %vm317_vm1, %v316_v15  ;;  %v202_v35 = vld [vmem:[%s418_s1] ss:$0 sm:$0xff]  ;;  %s318_s1 = smov [#allocation7]  }
  0x2a   :  { %212 = vmatpush3.bf16.msra.mxu0 %v228_v14  ;;  %v203_v39 = vld [vmem:[%s419_s2] ss:$0 sm:$0xff]  ;;  %s189_s25 = sshll.u32 %s318_s1, 4  ;;  %s190_s25 = int_to_ptr.vmem [resolvable:$true] %s189_s25 }
  0x2b   :  { %213 = vmatprep.subr.bf16.mxu0 %v316_v15  ;;  %v204_v44 = vld [vmem:[%s421_s4] ss:$0 sm:$0xff]  ;;  %s282_s2 = scalar_lea.vmem %s190_s25, 256  ;;  %p287_p3 = scmp.lt.s32.totalorder %s190_s25, %s190_s25 }
  0x2c   :  { %p283_p2 = scmp.ne.s32.totalorder %s190_s25, %s282_s2  ;;  %p288_p4 = scmp.lt.s32.totalorder %s282_s2, %s282_s2 }
  0x2d   :  { %60 = vadd.xlane.f32.xlu0 %v59_v3 }
  0x2e   :  { %214 = vmatpush3.bf16.msra.mxu0 %v229_v16  ;;  %p289_p5 = por %p288_p4, %p287_p3 }
  0x30   :  { %p290_p6 = pnand %p289_p5, %p283_p2 }
  0xb6   :  { %v58_v4 = vpop.xlane.xlu0 %57 }
  0xb7   :  { %v63_v5 = vmul.f32 0.03125, %v58_v4 }
  0xb9   :  { %v65_v6 = vsub.f32 %v376_v0, %v63_v5 }
  0xba   :  { %v61_v7 = vpop.xlane.xlu0 %60 }
  0xbb   :  { %v64_v8 = vmul.f32 0.03125, %v61_v7  ;;  %v67_v9 = vmul.f32 %v65_v6, %v65_v6 }
  0xbd   :  { %v66_v10 = vsub.f32 %v378_v1, %v64_v8  ;;  %v69_v11 = vsel %vm55_vm0, %v67_v9, 0.0 }
  0xbe   :  { %70 = vadd.xlane.f32.xlu1 %v69_v11 }
  0xbf   :  { %v68_v12 = vmul.f32 %v66_v10, %v66_v10 }
  0xc1   :  { %v72_v13 = vsel %vm55_vm0, %v68_v12, 0.0 }
  0xc2   :  { %73 = vadd.xlane.f32.xlu1 %v72_v13 }
 0x14b   :  { %v71_v17 = vpop.xlane.xlu1 %70 }
 0x14c   :  { %v75_v18 = vmul.f32 0.032258064, %v71_v17 }
 0x14e   :  { %230 = vrsqrt.f32 %v75_v18  ;;  %vm79_vm2 = vcmp.eq.f32.partialorder %v75_v18, inf  ;;  %v82_v23 = vand.u32 2147483648, %v75_v18  ;;  %vm81_vm3 = vcmp.eq.f32.partialorder %v75_v18, 0.0 }
 0x14f   :  { %v74_v19 = vpop.xlane.xlu1 %73 }
 0x150   :  { %v76_v20 = vmul.f32 0.032258064, %v74_v19 }
 0x152   :  { %232 = vrsqrt.f32 %v76_v20  ;;  %vm86_vm4 = vcmp.eq.f32.partialorder %v76_v20, inf  ;;  %v89_v29 = vand.u32 2147483648, %v76_v20  ;;  %vm88_vm5 = vcmp.eq.f32.partialorder %v76_v20, 0.0 }
 0x158   :  { %v231_v21 = vpop.eup %230 }
 0x159   :  { %v78_v22 = vmul.f32 %v231_v21, %v75_v18 }
 0x15b   :  { %v80_v24 = vsel %vm79_vm2, %v75_v18, %v78_v22 }
 0x15c   :  { %v233_v25 = vpop.eup %232  ;;  %v83_v26 = vsel %vm81_vm3, %v82_v23, %v80_v24 }
 0x15d   :  { %v91_v27 = vadd.f32 1e-06, %v83_v26  ;;  %v85_v28 = vmul.f32 %v233_v25, %v76_v20 }
 0x15f   :  { %234 = vrcp.f32 %v91_v27  ;;  %v87_v30 = vsel %vm86_vm4, %v76_v20, %v85_v28 }
 0x160   :  { %v90_v31 = vsel %vm88_vm5, %v89_v29, %v87_v30 }
 0x161   :  { %v92_v32 = vadd.f32 1e-06, %v90_v31 }
 0x163   :  { %236 = vrcp.f32 %v92_v32 }
 0x169   :  { %v235_v33 = vpop.eup %234 }
 0x16a   :  { %v95_v34 = vmul.f32 %v235_v33, %v65_v6 }
 0x16c   :  { %v103_v38 = vmul.f32 %v202_v35, %v95_v34 }
 0x16d   :  { %v237_v36 = vpop.eup %236 }
 0x16e   :  { %v96_v37 = vmul.f32 %v237_v36, %v66_v10  ;;  %v111_v41 = vadd.f32 %v203_v39, %v103_v38 }
 0x170   :  { %v104_v40 = vmul.f32 %v202_v35, %v96_v37 }
 0x172   :  { %v112_v42 = vadd.f32 %v203_v39, %v104_v40 }
 0x174   :  { %v113_v43 = vpack.c.bf16 %v112_v42, %v111_v41 }
 0x176   :  { %216 = vmatmul.mubr.msk.bf16.vlgmr.msra.gmra.mrb[0].mxu0 %vm55_vm0, %v113_v43 }
 0x249   :  { %v173_v45 = vpop.f32.mrb[0].mxu0 }
 0x24a   :  { %v174_v46 = vadd.f32 %v204_v44, %v173_v45  ;;  %v217_v47 = vpop.f32.mrb[1].mxu0 }
 0x24b   :  { %v176_v48 = vpop.f32.mrb[2].mxu0 }
 0x24c   :  { %v180_v49 = vadd.f32 %v174_v46, %v376_v0  ;;  %v177_v50 = vadd.f32 %v204_v44, %v176_v48  ;;  %v218_v51 = vpop.f32.mrb[3].mxu0 }
 0x24e   :  { %182 = vst.msk [vmem:[#allocation7] sm:$0xff] %vm55_vm0, %v180_v49  ;;  %v181_v52 = vadd.f32 %v177_v50, %v378_v1 }
 0x250   :  { %183 = vst.msk [vmem:[#allocation7 + $0x8] sm:$0xff] %vm55_vm0, %v181_v52 }
 0x251   :  { %293 = shalt.err (!%p290_p6)
}
 0x252   :  { %s294_s27 = scalar_lea.hbm %s422_s5, 256 }
 0x253   :  { %p295_p7 = scmp.ne.s32.totalorder %s422_s5, %s294_s27  ;;  %p298_p8 = scmp.lt.u32.totalorder %s294_s27, %s422_s5 }
 0x255   :  { %p300_p9 = pnand %p298_p8, %p295_p7 }
 0x257   :  { %303 = shalt.err (!%p300_p9)
}
 0x258   :  { %195 = dma.vmem_to_hbm [thread:$0]  %s190_s25, 256, %s422_s5, [#allocation4], %s311_s28, %s311_s28, %s312_s29  }
 0x259   :  { %308 = dma.done.wait [#allocation4], 256  }
 0x25a   :  { %309 = vsyncadd [#allocation4], 4294967040 }
 0x25b   :  { %199 = vsyncpa [#allocation3], 1 }
 0x25c   :  { %200 = vsyncpa [#allocation6], 1 }
 0x25d   :  { %201 = vsyncpa [#allocation4], 1 }

</bundles_post_ra>
